<compile_context>
chip_gen: v7x
topology: tpu7x:2x2x1
jax: 0.10.0
libtpu: 0.0.40
codegen_flags: <defaults>
</compile_context>

<pallas_src>
import functools

import jax
import jax.numpy as jnp
from jax.experimental import pallas as pl
from jax.experimental.pallas import tpu as pltpu

LANE = 128


def _round_up(x, m):
    return ((x + m - 1) // m) * m


def _pick_tile(n_p, cap):
    """Largest power-of-two tile <= cap that divides n_p (n_p is a mult. of 128)."""
    for t in (2048, 1024, 512, 256, 128):
        if t <= cap and n_p % t == 0:
            return t
    return min(n_p, 128)


def _compiler_params(semantics, vmem_bytes):
    # Actual footprint + headroom, capped well under the smallest physical VMEM
    # (v7x: 64 MiB per TensorCore).
    vmem_bytes = int(vmem_bytes * 1.3) + (2 << 20)
    vmem_bytes = max(4 << 20, min(vmem_bytes, 40 << 20))
    return pltpu.CompilerParams(dimension_semantics=semantics,
                                vmem_limit_bytes=vmem_bytes)


# --------------------------------------------------------------------------
# Kernel 1: H_pre = X @ W1   (layer 1 only; row-tiled, K and out dims = 128)
# --------------------------------------------------------------------------
def _xw_kernel(x_ref, w_ref, o_ref):
    o_ref[...] = jnp.dot(x_ref[...], w_ref[...],
                         preferred_element_type=jnp.float32).astype(o_ref.dtype)


def _xw_matmul(x, w, tm):
    n_p, k = x.shape
    hp = w.shape[1]
    vmem = 2 * tm * k * 2 + 2 * k * hp * 2 + 2 * tm * hp * 2
    return pl.pallas_call(
        _xw_kernel,
        out_shape=jax.ShapeDtypeStruct((n_p, hp), jnp.bfloat16),
        grid_spec=pltpu.PrefetchScalarGridSpec(
            num_scalar_prefetch=0,
            grid=(n_p // tm,),
            in_specs=[pl.BlockSpec((tm, k), lambda i: (i, 0)),
                      pl.BlockSpec((k, hp), lambda i: (0, 0))],
            out_specs=pl.BlockSpec((tm, hp), lambda i: (i, 0))),
        compiler_params=_compiler_params(("parallel",), vmem),
    )(x, w)


# --------------------------------------------------------------------------
# Kernel 2: AH pass.
#   acc = A_hat[i-tile] @ H_pre (H_pre fully VMEM-resident, sliced along K)
#   finalize (k == last): out = [relu](acc + b) [ @ W_next ]
# --------------------------------------------------------------------------
def _ah_kernel(a_ref, h_ref, b_ref, *rest, relu, fuse_w, tk):
    if fuse_w:
        w_ref, o_ref, acc_ref = rest
    else:
        o_ref, acc_ref = rest

    k = pl.program_id(1)

    @pl.when(k == 0)
    def _():
        acc_ref[...] = jnp.zeros_like(acc_ref)

    off = pl.multiple_of(k * tk, tk)
    acc_ref[...] += jnp.dot(a_ref[...], h_ref[pl.ds(off, tk), :],
                            preferred_element_type=jnp.float32)

    @pl.when(k == pl.num_programs(1) - 1)
    def _():
        out = acc_ref[...] + b_ref[...]          # bias (+ ReLU) in f32
        if relu:
            out = jnp.maximum(out, 0.0)
        if fuse_w:                               # fused next-layer X @ W
            out = jnp.dot(out.astype(jnp.bfloat16), w_ref[...],
                          preferred_element_type=jnp.float32)
        o_ref[...] = out.astype(o_ref.dtype)


def _ah_matmul(a_hat, h_pre, bias, tm, tk, *, relu, w_next=None,
               out_dtype=jnp.bfloat16):
    n_p = a_hat.shape[0]
    hp = h_pre.shape[1]
    fuse_w = w_next is not None
    out_bytes = jnp.dtype(out_dtype).itemsize

    in_specs = [
        pl.BlockSpec((tm, tk), lambda i, k: (i, k)),       # A_hat tile (streamed)
        pl.BlockSpec((n_p, hp), lambda i, k: (0, 0)),      # H_pre fully resident
        pl.BlockSpec((1, hp), lambda i, k: (0, 0)),        # bias
    ]
    args = [a_hat, h_pre, bias]
    if fuse_w:
        in_specs.append(pl.BlockSpec((hp, hp), lambda i, k: (0, 0)))  # W_next
        args.append(w_next)

    # True footprint (no double counting): double-buffered A tiles + resident
    # H_pre (counted x2 defensively) + small resident operands + out + f32 acc.
    vmem = (2 * tm * tk * 2
            + 2 * n_p * hp * 2
            + 2 * hp * 4
            + (2 * hp * hp * 2 if fuse_w else 0)
            + 2 * tm * hp * out_bytes
            + tm * hp * 4)

    kernel = functools.partial(_ah_kernel, relu=relu, fuse_w=fuse_w, tk=tk)
    return pl.pallas_call(
        kernel,
        out_shape=jax.ShapeDtypeStruct((n_p, hp), out_dtype),
        grid_spec=pltpu.PrefetchScalarGridSpec(
            num_scalar_prefetch=0,
            grid=(n_p // tm, n_p // tk),
            in_specs=in_specs,
            out_specs=pl.BlockSpec((tm, hp), lambda i, k: (i, 0)),
            scratch_shapes=[pltpu.VMEM((tm, hp), jnp.float32)]),
        compiler_params=_compiler_params(("parallel", "arbitrary"), vmem),
    )(*args)


# --------------------------------------------------------------------------
# Kernel 3: logits = (P @ H3) @ W_lin + b_lin   (single resident step, f32)
# --------------------------------------------------------------------------
def _pool_lin_kernel(p_ref, h_ref, w_ref, b_ref, o_ref):
    emb = jnp.dot(p_ref[...], h_ref[...], preferred_element_type=jnp.float32)
    # TODO(synk): F.dropout(p=0.5) training-mode not implemented; eval identity.
    o_ref[...] = jnp.dot(emb, w_ref[...],
                         preferred_element_type=jnp.float32) + b_ref[...]


def _pool_linear(pool, h3, wlin, blin):
    g_p, n_p = pool.shape
    hp = h3.shape[1]
    cp = wlin.shape[1]
    vmem = 2 * (g_p * n_p * 4 + n_p * hp * 4 + hp * cp * 4 + cp * 4 + g_p * cp * 4)
    return pl.pallas_call(
        _pool_lin_kernel,
        out_shape=jax.ShapeDtypeStruct((g_p, cp), jnp.float32),
        grid_spec=pltpu.PrefetchScalarGridSpec(
            num_scalar_prefetch=0,
            grid=(1,),
            in_specs=[pl.BlockSpec((g_p, n_p), lambda i: (0, 0)),
                      pl.BlockSpec((n_p, hp), lambda i: (0, 0)),
                      pl.BlockSpec((hp, cp), lambda i: (0, 0)),
                      pl.BlockSpec((1, cp), lambda i: (0, 0))],
            out_specs=pl.BlockSpec((g_p, cp), lambda i: (0, 0))),
        compiler_params=_compiler_params(("arbitrary",), vmem),
    )(pool, h3, wlin, blin)


# --------------------------------------------------------------------------
# Forward wrapper (matches GCN.forward in eval mode -> logits (G, num_classes))
# --------------------------------------------------------------------------
def gcn_forward(x, edge_index, batch, params, num_graphs):
    n, c = x.shape
    (w1, b1, w2, b2, w3, b3, wlin, blin) = params
    hidden = w1.shape[1]
    num_classes = wlin.shape[1]

    # Pad only to lane granularity; tiles are chosen to divide n_p.
    n_p = _round_up(max(n, LANE), LANE)
    cin = _round_up(c, LANE)
    hp = _round_up(hidden, LANE)
    cp = _round_up(num_classes, LANE)
    g_p = _round_up(num_graphs, 8)

    # AH tiles: large for DMA-row / step-overhead amortization, tm capped so the
    # "parallel" row axis keeps >= 2 tiles (v7x has 2 TensorCores per chip).
    tm = _pick_tile(n_p, min(1024, max(n_p // 2, LANE)))
    tk = _pick_tile(n_p, 2048)
    tm_xw = _pick_tile(n_p, 2048)

    src, dst = edge_index[0], edge_index[1]

    # Dense normalized adjacency D^-1/2 (A + I) D^-1/2 at padded size, bf16.
    # TODO(synk): for large sparse graphs replace this dense A_hat + AH pass
    # with a CSR / scalar-prefetch SpMM kernel and cache A_hat across calls
    # when the graph is static.
    a = jnp.zeros((n_p, n_p), jnp.float32).at[dst, src].add(1.0)
    a = a.at[jnp.arange(n), jnp.arange(n)].add(1.0)
    deg = a.sum(axis=1)
    dinv = jnp.where(deg > 0.0, jax.lax.rsqrt(jnp.maximum(deg, 1e-12)), 0.0)
    a_hat = (dinv[:, None] * a * dinv[None, :]).astype(jnp.bfloat16)

    # Mean-pool operator P (G_pad, N_pad), f32; padded nodes/graphs -> zero.
    batch_p = jnp.full((n_p,), -1, jnp.int32).at[:n].set(batch.astype(jnp.int32))
    onehot = (batch_p[None, :] == jnp.arange(g_p)[:, None]).astype(jnp.float32)
    counts = onehot.sum(axis=1, keepdims=True)
    pool = onehot / jnp.maximum(counts, 1.0)

    # Zero-padded operands (all last dims are multiples of 128 lanes).
    x_p = jnp.zeros((n_p, cin), jnp.bfloat16).at[:n, :c].set(x.astype(jnp.bfloat16))

    def pad_w(w, r, col, dtype):
        return jnp.zeros((r, col), dtype).at[:w.shape[0], :w.shape[1]].set(
            w.astype(dtype))

    def pad_b(b, col):
        return jnp.zeros((1, col), jnp.float32).at[0, :b.shape[0]].set(
            b.astype(jnp.float32))

    w1p = pad_w(w1, cin, hp, jnp.bfloat16)
    w2p = pad_w(w2, hp, hp, jnp.bfloat16)
    w3p = pad_w(w3, hp, hp, jnp.bfloat16)
    b1p, b2p, b3p = pad_b(b1, hp), pad_b(b2, hp), pad_b(b3, hp)
    wlp = pad_w(wlin, hp, cp, jnp.float32)      # head kept in f32 (precision)
    blp = pad_b(blin, cp)

    # conv1: X @ W1 (standalone), then AH with next-layer W2 fused in finalize.
    h = _xw_matmul(x_p, w1p, tm_xw)                               # X @ W1
    h = _ah_matmul(a_hat, h, b1p, tm, tk, relu=True, w_next=w2p)  # relu(A h+b1)@W2
    h = _ah_matmul(a_hat, h, b2p, tm, tk, relu=True, w_next=w3p)  # relu(A h+b2)@W3
    h3 = _ah_matmul(a_hat, h, b3p, tm, tk, relu=False,
                    out_dtype=jnp.float32)                        # A h + b3 (f32)

    # global_mean_pool + Linear (dropout = identity in eval mode), f32 head.
    logits = _pool_linear(pool, h3, wlp, blp)
    return logits[:num_graphs, :num_classes]


def init_params(key, in_channels, hidden, num_classes):
    ks = jax.random.split(key, 8)
    w1 = 0.1 * jax.random.normal(ks[0], (in_channels, hidden), jnp.float32)
    b1 = 0.01 * jax.random.normal(ks[1], (hidden,), jnp.float32)
    w2 = 0.1 * jax.random.normal(ks[2], (hidden, hidden), jnp.float32)
    b2 = 0.01 * jax.random.normal(ks[3], (hidden,), jnp.float32)
    w3 = 0.1 * jax.random.normal(ks[4], (hidden, hidden), jnp.float32)
    b3 = 0.01 * jax.random.normal(ks[5], (hidden,), jnp.float32)
    wlin = 0.1 * jax.random.normal(ks[6], (hidden, num_classes), jnp.float32)
    blin = 0.01 * jax.random.normal(ks[7], (num_classes,), jnp.float32)
    return (w1, b1, w2, b2, w3, b3, wlin, blin)


if __name__ == "__main__":
    in_channels, hidden, num_classes = 4, 32, 3
    nodes_per_graph, num_graphs = 8, 2
    N = nodes_per_graph * num_graphs

    key = jax.random.PRNGKey(0)
    k_x, k_p = jax.random.split(key)

    x = jax.random.normal(k_x, (N, in_channels), jnp.float32)

    # Undirected ring graph per example (edges in both directions).
    edges = []
    for g in range(num_graphs):
        base = g * nodes_per_graph
        for i in range(nodes_per_graph):
            a = base + i
            b = base + (i + 1) % nodes_per_graph
            edges.append((a, b))
            edges.append((b, a))
    edge_index = jnp.array(edges, dtype=jnp.int32).T            # (2, E)
    batch = jnp.array(
        [g for g in range(num_graphs) for _ in range(nodes_per_graph)],
        dtype=jnp.int32)                                         # (N,)

    params = init_params(k_p, in_channels, hidden, num_classes)

    logits = gcn_forward(x, edge_index, batch, params, num_graphs)
    logits = jax.block_until_ready(logits)
    assert logits.shape == (num_graphs, num_classes)
    assert bool(jnp.all(jnp.isfinite(logits)))
    print("KERNEL_OK")
</pallas_src>

<mosaic_0001>
module attributes {stable_mosaic.version = 11 : i64} {
  func.func @_xw_kernel(%arg0: i32, %arg1: memref<128x128xbf16, #tpu.memory_space<vmem>>, %arg2: memref<128x128xbf16, #tpu.memory_space<vmem>>, %arg3: memref<128x128xbf16, #tpu.memory_space<vmem>>) attributes {dimension_semantics = [#tpu.dimension_semantics<parallel>], iteration_bounds = array<i64: 1>, scalar_prefetch = 0 : i64, scratch_operands = 0 : i64, tpu.core_type = #tpu.core_type<tc>, window_params = [{transform_indices = @transform_0, window_bounds = array<i64: 128, 128>}, {pipeline_mode = #tpu.pipeline_mode<synchronous>, transform_indices = @transform_1, window_bounds = array<i64: 128, 128>}, {transform_indices = @transform_2, window_bounds = array<i64: 128, 128>}]} {
    %c0 = arith.constant 0 : index
    %c0_0 = arith.constant 0 : index
    %0 = vector.load %arg1[%c0, %c0_0] : memref<128x128xbf16, #tpu.memory_space<vmem>>, vector<128x128xbf16>
    %c0_1 = arith.constant 0 : index
    %c0_2 = arith.constant 0 : index
    %1 = vector.load %arg2[%c0_1, %c0_2] : memref<128x128xbf16, #tpu.memory_space<vmem>>, vector<128x128xbf16>
    %cst = arith.constant dense<0.000000e+00> : vector<128x128xf32>
    %2 = tpu.matmul %0, %1, %cst {dimension_numbers = #tpu.dot_dimension_numbers<[1], [0], [0], [1], [0, 0, 1, 1], [], []>} : vector<128x128xbf16>, vector<128x128xbf16>, vector<128x128xf32> -> vector<128x128xf32>
    %3 = arith.truncf %2 : vector<128x128xf32> to vector<128x128xbf16>
    %c0_3 = arith.constant 0 : index
    %c0_4 = arith.constant 0 : index
    %4 = vector.load %arg3[%c0_3, %c0_4] : memref<128x128xbf16, #tpu.memory_space<vmem>>, vector<128x128xbf16>
    tpu.vector_store %arg3[%c0_3, %c0_4], %3 {strides = array<i32>} : memref<128x128xbf16, #tpu.memory_space<vmem>>, vector<128x128xbf16>,
    return
  }
  func.func @transform_0(%arg0: i32) -> (i32, i32) {
    %c0_i32 = arith.constant 0 : i32
    %c0_i32_0 = arith.constant 0 : i32
    return %arg0, %c0_i32 : i32, i32
  }
  func.func @transform_1(%arg0: i32) -> (i32, i32) {
    %c0_i32 = arith.constant 0 : i32
    %c0_i32_0 = arith.constant 0 : i32
    %c0_i32_1 = arith.constant 0 : i32
    return %c0_i32, %c0_i32_0 : i32, i32
  }
  func.func @transform_2(%arg0: i32) -> (i32, i32) {
    %c0_i32 = arith.constant 0 : i32
    %c0_i32_0 = arith.constant 0 : i32
    return %arg0, %c0_i32 : i32, i32
  }
}

</mosaic_0001>

<bundles_post_ra>
// kernel: tpu_custom_call.1
= control target key start
LH: loop header
LB: loop body
LE: loop exit
PB: predicated region body
PF: predicated region fallthrough
CT: control target
= control target key end

     0   :  { %7 = vsyncpa [#allocation3], 0  ;;  %s681_s0 = inlined_call_operand.hbm [shape: bf16[128,128], index: 0, kind: input, shape index: {}]   ;;  %s682_s1 = inlined_call_operand.hbm [shape: bf16[128,128], index: 1, kind: input, shape index: {}]   ;;  %s683_s2 = inlined_call_operand.hbm [shape: bf16[128,128], index: 2, kind: output, shape index: {}]  }
   0x1   :  { %8 = vsyncpa [#allocation6], 0 }
   0x2   :  { %9 = vsyncpa [#allocation4], 0  ;;  %s616_s9 = smov [#allocation2]   ;;  %s544_s13 = scalar_lea.hbm %s681_s0, 1024 }
   0x3   :  { %s15_s10 = sshll.u32 %s616_s9, 4  ;;  %p545_p0 = scmp.ne.s32.totalorder %s681_s0, %s544_s13  ;;  %s16_s10 = int_to_ptr.vmem [resolvable:$true] %s15_s10 }
   0x4   :  { %p548_p1 = scmp.lt.u32.totalorder %s544_s13, %s681_s0 }
   0x6   :  { %p550_p2 = pnand %p548_p1, %p545_p0 }
   0x8   :  { %553 = shalt.err (!%p550_p2)
}
   0x9   :  { %s554_s18 = scalar_lea.vmem %s16_s10, 1024  ;;  %p559_p4 = scmp.lt.s32.totalorder %s16_s10, %s16_s10 }
   0xa   :  { %p555_p3 = scmp.ne.s32.totalorder %s16_s10, %s554_s18  ;;  %p560_p5 = scmp.lt.s32.totalorder %s554_s18, %s554_s18 }
   0xc   :  { %p561_p6 = por %p560_p5, %p559_p4 }
   0xe   :  { %p562_p7 = pnand %p561_p6, %p555_p3 }
  0x10   :  { %565 = shalt.err (!%p562_p7)
}
  0x11   :  { %s617_s19 = smov 64   ;;  %s618_s20 = smov 4  }
  0x12   :  { %21 = dma.hbm_to_vmem [thread:$0]  %s681_s0, 1024, %s16_s10, [#allocation3], %s617_s19, %s617_s19, %s618_s20  }
  0x13   :  { %s619_s23 = smov [#allocation5]   ;;  %s566_s27 = scalar_lea.hbm %s682_s1, 1024 }
  0x14   :  { %s27_s24 = sshll.u32 %s619_s23, 4  ;;  %p567_p8 = scmp.ne.s32.totalorder %s682_s1, %s566_s27  ;;  %s28_s24 = int_to_ptr.vmem [resolvable:$true] %s27_s24 }
  0x15   :  { %p570_p9 = scmp.lt.u32.totalorder %s566_s27, %s682_s1 }
  0x17   :  { %p572_p10 = pnand %p570_p9, %p567_p8 }
  0x19   :  { %575 = shalt.err (!%p572_p10)
}
  0x1a   :  { %s576_s4 = scalar_lea.vmem %s28_s24, 1024  ;;  %p581_p12 = scmp.lt.s32.totalorder %s28_s24, %s28_s24 }
  0x1b   :  { %p577_p11 = scmp.ne.s32.totalorder %s28_s24, %s576_s4  ;;  %p582_p13 = scmp.lt.s32.totalorder %s576_s4, %s576_s4 }
  0x1d   :  { %p583_p0 = por %p582_p13, %p581_p12 }
  0x1f   :  { %p584_p1 = pnand %p583_p0, %p577_p11 }
  0x21   :  { %587 = shalt.err (!%p584_p1)
}
  0x22   :  { %33 = dma.hbm_to_vmem [thread:$0]  %s682_s1, 1024, %s28_s24, [#allocation6], %s617_s19, %s617_s19, %s618_s20  }
  0x23   :  { %610 = dma.done.wait [#allocation3], 1024  }
  0x24   :  { %611 = vsyncadd [#allocation3], 4294966272 }
  0x25   :  { %612 = dma.done.wait [#allocation6], 1024  }
  0x26   :  { %613 = vsyncadd [#allocation6], 4294966272  ;;  %v528_v0 = vld [vmem:[#allocation5] sm:$0xff]   ;;  %v529_v1 = vld [vmem:[#allocation5 + $0x8] sm:$0xff]   ;;  %s620_s1 = smov [#allocation7]  }
  0x27   :  { %475 = vmatprep.subr.bf16.mxu0 %v528_v0  ;;  %507 = vmatprep.subr.bf16.mxu1 %v528_v0  ;;  %v530_v2 = vld [vmem:[#allocation5 + $0x10] sm:$0xff]   ;;  %v531_v3 = vld [vmem:[#allocation5 + $0x18] sm:$0xff]   ;;  %v536_v4 = vld [vmem:[#allocation2] sm:$0xff]   ;;  %s351_s6 = sshll.u32 %s620_s1, 4  ;;  %s352_s6 = int_to_ptr.vmem [resolvable:$true] %s351_s6 }
  0x28   :  { %476 = vmatpush3.bf16.msra.mxu0 %v528_v0  ;;  %515 = vmatpush3.bf16.msra.mxu1 %v528_v0  ;;  %v537_v5 = vld [vmem:[#allocation2 + $0x20] sm:$0xff]   ;;  %v533_v7 = vld [vmem:[#allocation5 + $0x28] sm:$0xff]   ;;  %v534_v8 = vld [vmem:[#allocation5 + $0x30] sm:$0xff]   ;;  %s588_s7 = scalar_lea.vmem %s352_s6, 1024  ;;  %p593_p3 = scmp.lt.s32.totalorder %s352_s6, %s352_s6 }
  0x29   :  { %477 = vmatprep.subr.bf16.mxu0 %v529_v1  ;;  %508 = vmatprep.subr.bf16.mxu1 %v529_v1  ;;  %v532_v6 = vld [vmem:[#allocation5 + $0x20] sm:$0xff]   ;;  %v535_v9 = vld [vmem:[#allocation5 + $0x38] sm:$0xff]   ;;  %v538_v10 = vld [vmem:[#allocation2 + $0x8] sm:$0xff]   ;;  %p589_p2 = scmp.ne.s32.totalorder %s352_s6, %s588_s7  ;;  %p594_p4 = scmp.lt.s32.totalorder %s588_s7, %s588_s7 }
  0x2a   :  { %491 = vmatprep.mubr.bf16.mxu0 %v536_v4  ;;  %499 = vmatprep.mubr.bf16.mxu1 %v537_v5  ;;  %v539_v11 = vld [vmem:[#allocation2 + $0x28] sm:$0xff]   ;;  %v540_v12 = vld [vmem:[#allocation2 + $0x10] sm:$0xff]   ;;  %v542_v14 = vld [vmem:[#allocation2 + $0x18] sm:$0xff]  }
  0x2b   :  { %v541_v13 = vld [vmem:[#allocation2 + $0x30] sm:$0xff]   ;;  %v543_v15 = vld [vmem:[#allocation2 + $0x38] sm:$0xff]   ;;  %p595_p5 = por %p594_p4, %p593_p3 }
  0x2c   :  { %478 = vmatpush3.bf16.msra.mxu0 %v529_v1  ;;  %516 = vmatpush3.bf16.msra.mxu1 %v529_v1 }
  0x2d   :  { %479 = vmatprep.subr.bf16.mxu0 %v530_v2  ;;  %509 = vmatprep.subr.bf16.mxu1 %v530_v2  ;;  %p596_p6 = pnand %p595_p5, %p589_p2 }
  0x30   :  { %480 = vmatpush3.bf16.msra.mxu0 %v530_v2  ;;  %517 = vmatpush3.bf16.msra.mxu1 %v530_v2 }
  0x31   :  { %481 = vmatprep.subr.bf16.mxu0 %v531_v3  ;;  %510 = vmatprep.subr.bf16.mxu1 %v531_v3 }
  0x34   :  { %482 = vmatpush3.bf16.msra.mxu0 %v531_v3  ;;  %518 = vmatpush3.bf16.msra.mxu1 %v531_v3 }
  0x35   :  { %483 = vmatprep.subr.bf16.mxu0 %v532_v6  ;;  %511 = vmatprep.subr.bf16.mxu1 %v532_v6 }
  0x38   :  { %484 = vmatpush3.bf16.msra.mxu0 %v532_v6  ;;  %519 = vmatpush3.bf16.msra.mxu1 %v532_v6 }
  0x39   :  { %485 = vmatprep.subr.bf16.mxu0 %v533_v7  ;;  %512 = vmatprep.subr.bf16.mxu1 %v533_v7 }
  0x3c   :  { %486 = vmatpush3.bf16.msra.mxu0 %v533_v7  ;;  %520 = vmatpush3.bf16.msra.mxu1 %v533_v7 }
  0x3d   :  { %487 = vmatprep.subr.bf16.mxu0 %v534_v8  ;;  %513 = vmatprep.subr.bf16.mxu1 %v534_v8 }
  0x40   :  { %488 = vmatpush3.bf16.msra.mxu0 %v534_v8  ;;  %521 = vmatpush3.bf16.msra.mxu1 %v534_v8 }
  0x41   :  { %489 = vmatprep.subr.bf16.mxu0 %v535_v9  ;;  %514 = vmatprep.subr.bf16.mxu1 %v535_v9 }
  0x44   :  { %490 = vmatpush3.bf16.msra.mxu0 %v535_v9  ;;  %522 = vmatpush3.bf16.msra.mxu1 %v535_v9 }
  0x47   :  { %492 = vmatmul.mubr.bf16.vlgmr.msra.gmra.mrb[0].mxu0 %v538_v10  ;;  %500 = vmatmul.mubr.bf16.vlgmr.msra.gmra.mrb[0].mxu1 %v539_v11 }
  0x48   :  { %495 = vmatprep.mubr.bf16.mxu0 %v540_v12  ;;  %503 = vmatprep.mubr.bf16.mxu1 %v541_v13 }
  0x4f   :  { %496 = vmatmul.mubr.bf16.gmra.mrb[4].mxu0 %v542_v14  ;;  %504 = vmatmul.mubr.bf16.gmra.mrb[4].mxu1 %v543_v15 }
 0x11a   :  { %v493_v16 = vpop.f32.mrb[0].mxu0  ;;  %v501_v17 = vpop.f32.mrb[0].mxu1 }
 0x11b   :  { %v203_v18 = vpop.f32.mrb[1].mxu0  ;;  %v235_v19 = vpop.f32.mrb[1].mxu1 }
 0x11c   :  { %v494_v20 = vpop.f32.mrb[2].mxu0  ;;  %v502_v21 = vpop.f32.mrb[2].mxu1 }
 0x11d   :  { %v420_v22 = vpack.c.bf16 %v494_v20, %v493_v16  ;;  %v440_v23 = vpack.c.bf16 %v502_v21, %v501_v17  ;;  %v206_v24 = vpop.f32.mrb[3].mxu0  ;;  %v238_v25 = vpop.f32.mrb[3].mxu1 }
 0x11e   :  { %v415_v26 = vpack.c.bf16 %v206_v24, %v203_v18  ;;  %v435_v27 = vpack.c.bf16 %v238_v25, %v235_v19 }
 0x11f   :  { %452 = vst [vmem:[#allocation7 + $0x8] sm:$0xff] %v420_v22   ;;  %456 = vst [vmem:[#allocation7 + $0x28] sm:$0xff] %v440_v23  }
 0x120   :  { %416 = vst [vmem:[#allocation7] sm:$0xff] %v415_v26   ;;  %455 = vst [vmem:[#allocation7 + $0x20] sm:$0xff] %v435_v27  }
 0x122   :  { %v497_v28 = vpop.f32.mrb[4].mxu0  ;;  %v505_v29 = vpop.f32.mrb[4].mxu1 }
 0x123   :  { %v219_v30 = vpop.f32.mrb[5].mxu0  ;;  %v251_v31 = vpop.f32.mrb[5].mxu1 }
 0x124   :  { %v498_v32 = vpop.f32.mrb[6].mxu0  ;;  %v506_v33 = vpop.f32.mrb[6].mxu1 }
 0x125   :  { %v430_v34 = vpack.c.bf16 %v498_v32, %v497_v28  ;;  %v450_v35 = vpack.c.bf16 %v506_v33, %v505_v29  ;;  %v222_v36 = vpop.f32.mrb[7].mxu0  ;;  %v254_v37 = vpop.f32.mrb[7].mxu1 }
 0x126   :  { %v425_v38 = vpack.c.bf16 %v222_v36, %v219_v30  ;;  %v445_v39 = vpack.c.bf16 %v254_v37, %v251_v31 }
 0x127   :  { %454 = vst [vmem:[#allocation7 + $0x18] sm:$0xff] %v430_v34   ;;  %458 = vst [vmem:[#allocation7 + $0x38] sm:$0xff] %v450_v35  }
 0x128   :  { %453 = vst [vmem:[#allocation7 + $0x10] sm:$0xff] %v425_v38   ;;  %457 = vst [vmem:[#allocation7 + $0x30] sm:$0xff] %v445_v39  }
 0x129   :  { %599 = shalt.err (!%p596_p6)
}
 0x12a   :  { %s600_s10 = scalar_lea.hbm %s683_s2, 1024 }
 0x12b   :  { %p601_p7 = scmp.ne.s32.totalorder %s683_s2, %s600_s10  ;;  %p604_p8 = scmp.lt.u32.totalorder %s600_s10, %s683_s2 }
 0x12d   :  { %p606_p9 = pnand %p604_p8, %p601_p7 }
 0x12f   :  { %609 = shalt.err (!%p606_p9)
}
 0x130   :  { %357 = dma.vmem_to_hbm [thread:$0]  %s352_s6, 1024, %s683_s2, [#allocation4], %s617_s19, %s617_s19, %s618_s20  }
 0x131   :  { %614 = dma.done.wait [#allocation4], 1024  }
 0x132   :  { %615 = vsyncadd [#allocation4], 4294966272 }
 0x133   :  { %361 = vsyncpa [#allocation3], 1 }
 0x134   :  { %362 = vsyncpa [#allocation6], 1 }
 0x135   :  { %363 = vsyncpa [#allocation4], 1 }

</bundles_post_ra>
